<compile_context>
chip_gen: v5e
topology: v5e:2x2
jax: 0.10.0
libtpu: 0.0.40
codegen_flags: <defaults>
</compile_context>

<pallas_src>
import functools

import jax
import jax.numpy as jnp
from jax.experimental import pallas as pl
from jax.experimental.pallas import tpu as pltpu

_LANE = 128
_VMEM_CAP = 40 << 20        # scoped-VMEM ceiling: safe on v7x's 64 MiB/TC, tiny vs v5e/v6e 128 MiB
_VMEM_HEADROOM = 2 << 20
_WEIGHT_BYTES = 64 * 1024   # generous bound for all (sublane/lane-padded) weight + bias tiles


# ------------------------------- kernel ------------------------------------

def fcnet_kernel(x_ref, w1_ref, b1_ref, w2_ref, b2_ref, w3_ref, b3_ref, out_ref):
    """One lane-dense batch tile: x (2, T) -> log_softmax logits (4, T).

    All three Linear layers run on the MXU (it is otherwise nearly idle; at
    large tiles the binding VLIW resource is the 4 VALU slots, so even the
    K=2 fc1 matmul is a win over broadcast-FMAs).  Bias adds / ReLU stay on
    the VPU, the 4-row max/sum reductions lower to XLU sublane reduces, and
    exp/log go to the EUP.
    """
    x = x_ref[...]                                            # (2, T) f32
    mm_dtype = w2_ref.dtype   # f32 by default; bf16 if caller pre-cast (v5e MXU path)

    # fc1: 2 -> 30 (MXU), bias + ReLU on the VPU.
    h1 = jnp.dot(w1_ref[...], x, preferred_element_type=jnp.float32) + b1_ref[...]
    h1 = jnp.maximum(h1, 0.0)                                 # (30, T)

    # fc2: 30 -> 20
    h2 = jnp.dot(w2_ref[...], h1.astype(mm_dtype),
                 preferred_element_type=jnp.float32) + b2_ref[...]
    h2 = jnp.maximum(h2, 0.0)                                 # (20, T)

    # fc3: 20 -> 4
    logits = jnp.dot(w3_ref[...], h2.astype(mm_dtype),
                     preferred_element_type=jnp.float32) + b3_ref[...]   # (4, T)

    # log_softmax over the 4 logit rows (sublane axis), numerically stable
    # shifted form.  axis=0 reduces use the otherwise-idle XLU slot.
    m = jnp.max(logits, axis=0, keepdims=True)                # (1, T)
    shifted = logits - m                                      # (4, T)
    s = jnp.sum(jnp.exp(shifted), axis=0, keepdims=True)      # (1, T)
    out_ref[...] = shifted - jnp.log(s)


# ------------------------------ tiling helpers ------------------------------

def _round_up(v, m):
    return (v + m - 1) // m * m


def _bytes_per_lane():
    """f32 VMEM bytes needed per element of the tile's lane axis, using
    sublane-padded row counts (Mosaic pads the second-to-last dim to 8)."""
    streamed = 2 * (_round_up(2, 8) + _round_up(4, 8))        # x / out tiles, double-buffered
    interm = (_round_up(30, 8) + _round_up(20, 8)             # h1, h2
              + 4 * _round_up(4, 8))                          # logits / shifted / exp + slack
    return 4 * (streamed + interm)                            # = 480 B per lane element


def _pick_tile(n, tile_n):
    """Lane-align the requested tile, clamp it to the VMEM budget, and keep
    >= 2 grid steps whenever the batch allows it (megacore on v7x)."""
    bpl = _bytes_per_lane()
    max_tile = ((_VMEM_CAP - _VMEM_HEADROOM - _WEIGHT_BYTES) // bpl) // _LANE * _LANE
    tile_n = max(_LANE, min(int(tile_n), max_tile) // _LANE * _LANE)
    if n > _LANE:
        tile_n = min(tile_n, _round_up(pl.cdiv(n, 2), _LANE))
    return tile_n, bpl


# ------------------------------- entry points -------------------------------

@functools.partial(jax.jit, static_argnames=("tile_n", "use_bf16_matmul"))
def fcnet_forward_t(xt, params, *, tile_n=32768, use_bf16_matmul=False):
    """Lane-dense FCNet forward: xt is (2, N) with the batch on the 128-lane
    axis; returns (4, N) log-probabilities.  This is the layout the kernel
    streams, so there are no wrapper-side pad/transpose round trips (only a
    pad of the ragged tail tile, if any).  Prefer this for large batches."""
    w1, b1, w2, b2, w3, b3 = params
    xt = xt.astype(jnp.float32)
    n = xt.shape[1]

    tile_n, bpl = _pick_tile(n, tile_n)
    n_pad = pl.cdiv(n, tile_n) * tile_n
    if n_pad != n:
        xt = jnp.pad(xt, ((0, 0), (0, n_pad - n)))
    grid = (n_pad // tile_n,)

    if use_bf16_matmul:                         # v5e MXU path: bf16 operands, f32 accumulate
        w2 = w2.astype(jnp.bfloat16)
        w3 = w3.astype(jnp.bfloat16)

    # Scoped VMEM: streamed double-buffered tiles + sublane-padded
    # intermediates + resident weights + headroom; legal on v5e/v6e/v7x.
    vmem_limit = int(min(max(bpl * tile_n + _WEIGHT_BYTES + _VMEM_HEADROOM, 16 << 20),
                         _VMEM_CAP))

    resident = lambda i: (0, 0)                 # weights DMA'd once, stay VMEM-resident
    out_t = pl.pallas_call(
        fcnet_kernel,
        out_shape=jax.ShapeDtypeStruct((4, n_pad), jnp.float32),
        grid=grid,
        in_specs=[
            pl.BlockSpec((2, tile_n), lambda i: (0, i)),       # x tile (streamed)
            pl.BlockSpec(w1.shape, resident),
            pl.BlockSpec(b1.shape, resident),
            pl.BlockSpec(w2.shape, resident),
            pl.BlockSpec(b2.shape, resident),
            pl.BlockSpec(w3.shape, resident),
            pl.BlockSpec(b3.shape, resident),
        ],
        out_specs=pl.BlockSpec((4, tile_n), lambda i: (0, i)),
        compiler_params=pltpu.CompilerParams(
            dimension_semantics=("parallel",),
            vmem_limit_bytes=vmem_limit,
        ),
    )(xt, w1, b1, w2, b2, w3, b3)

    return out_t if n_pad == n else out_t[:, :n]


@functools.partial(jax.jit, static_argnames=("tile_n", "use_bf16_matmul"))
def fcnet_forward(x, params, *, tile_n=32768, use_bf16_matmul=False):
    """Exact FCNet.forward semantics: x.view(-1, 2) -> fc/relu/fc/relu/fc ->
    log_softmax, returned as (N, 4).  Thin layout wrapper over
    fcnet_forward_t; the two transposes here are the only extra HBM traffic,
    so large-batch callers should use fcnet_forward_t directly."""
    x2 = x.reshape(-1, 2).astype(jnp.float32)   # same as torch x.view(-1, 2)
    out_t = fcnet_forward_t(x2.T, params, tile_n=tile_n, use_bf16_matmul=use_bf16_matmul)
    return out_t.T


# ------------------------------ params / reference ---------------------------

def init_params(key):
    """nn.Linear-style init.  Weights in PyTorch (out_features, in_features)
    layout; biases as (out_features, 1) columns for the transposed kernel."""
    ks = jax.random.split(key, 6)

    def uniform(k, shape, fan_in):
        bound = 1.0 / jnp.sqrt(fan_in)
        return jax.random.uniform(k, shape, jnp.float32, -bound, bound)

    w1 = uniform(ks[0], (30, 2), 2.0)     # fc1.weight
    b1 = uniform(ks[1], (30, 1), 2.0)     # fc1.bias
    w2 = uniform(ks[2], (20, 30), 30.0)   # fc2.weight
    b2 = uniform(ks[3], (20, 1), 30.0)    # fc2.bias
    w3 = uniform(ks[4], (4, 20), 20.0)    # fc3.weight
    b3 = uniform(ks[5], (4, 1), 20.0)     # fc3.bias
    return (w1, b1, w2, b2, w3, b3)


def fcnet_reference(x, params):
    """Pure-JAX reference for correctness checking."""
    x2 = x.reshape(-1, 2).astype(jnp.float32)
    w1, b1, w2, b2, w3, b3 = params
    h1 = jnp.maximum(x2 @ w1.T + b1[:, 0], 0.0)
    h2 = jnp.maximum(h1 @ w2.T + b2[:, 0], 0.0)
    logits = h2 @ w3.T + b3[:, 0]
    return jax.nn.log_softmax(logits, axis=1)


if __name__ == "__main__":
    key = jax.random.PRNGKey(0)
    kx, kp = jax.random.split(key)

    # Small batch of 2-D points (forward implies x.view(-1, 2)).
    x = jax.random.normal(kx, (200, 2), dtype=jnp.float32)
    params = init_params(kp)
    ref = fcnet_reference(x, params)

    # FCNet-semantics entry point (standard (N,2) -> (N,4) layout).
    out = jax.block_until_ready(fcnet_forward(x, params))
    assert out.shape == (200, 4), out.shape
    assert jnp.allclose(out, ref, atol=1e-5, rtol=1e-5), "mismatch vs reference (fcnet_forward)"
    assert jnp.allclose(jnp.sum(jnp.exp(out), axis=1), 1.0, atol=1e-5)

    # Lane-dense end-to-end path (no wrapper transposes) -- preferred for big batches.
    out_t = jax.block_until_ready(fcnet_forward_t(x.T, params))
    assert out_t.shape == (4, 200), out_t.shape
    assert jnp.allclose(out_t.T, ref, atol=1e-5, rtol=1e-5), "mismatch vs reference (lane-dense)"

    # Small explicit tile -> multi-step grid plus a zero-padded tail tile.
    out_small = jax.block_until_ready(fcnet_forward(x, params, tile_n=128))
    assert jnp.allclose(out_small, ref, atol=1e-5, rtol=1e-5), "mismatch vs reference (tile_n=128)"

    # Optional v5e MXU path: bf16 operands for fc2/fc3 dots, f32 accumulation.
    out_bf16 = jax.block_until_ready(fcnet_forward(x, params, use_bf16_matmul=True))
    assert jnp.allclose(out_bf16, ref, atol=5e-2, rtol=5e-2), "mismatch vs reference (bf16 matmul)"
    assert jnp.allclose(jnp.sum(jnp.exp(out_bf16), axis=1), 1.0, atol=1e-4)

    print("KERNEL_OK")
</pallas_src>

<mosaic_0001>
module attributes {stable_mosaic.version = 11 : i64} {
  func.func @fcnet_kernel(%arg0: i32, %arg1: memref<2x128xf32, #tpu.memory_space<vmem>>, %arg2: memref<30x2xf32, #tpu.memory_space<vmem>>, %arg3: memref<30x1xf32, #tpu.memory_space<vmem>>, %arg4: memref<20x30xf32, #tpu.memory_space<vmem>>, %arg5: memref<20x1xf32, #tpu.memory_space<vmem>>, %arg6: memref<4x20xf32, #tpu.memory_space<vmem>>, %arg7: memref<4x1xf32, #tpu.memory_space<vmem>>, %arg8: memref<4x128xf32, #tpu.memory_space<vmem>>) attributes {dimension_semantics = [#tpu.dimension_semantics<parallel>], iteration_bounds = array<i64: 2>, scalar_prefetch = 0 : i64, scratch_operands = 0 : i64, tpu.core_type = #tpu.core_type<tc>, window_params = [{transform_indices = @transform_0, window_bounds = array<i64: 2, 128>}, {pipeline_mode = #tpu.pipeline_mode<synchronous>, transform_indices = @transform_1, window_bounds = array<i64: 30, 2>}, {pipeline_mode = #tpu.pipeline_mode<synchronous>, transform_indices = @transform_2, window_bounds = array<i64: 30, 1>}, {pipeline_mode = #tpu.pipeline_mode<synchronous>, transform_indices = @transform_3, window_bounds = array<i64: 20, 30>}, {pipeline_mode = #tpu.pipeline_mode<synchronous>, transform_indices = @transform_4, window_bounds = array<i64: 20, 1>}, {pipeline_mode = #tpu.pipeline_mode<synchronous>, transform_indices = @transform_5, window_bounds = array<i64: 4, 20>}, {pipeline_mode = #tpu.pipeline_mode<synchronous>, transform_indices = @transform_6, window_bounds = array<i64: 4, 1>}, {transform_indices = @transform_7, window_bounds = array<i64: 4, 128>}]} {
    %c0 = arith.constant 0 : index
    %c0_0 = arith.constant 0 : index
    %0 = vector.load %arg1[%c0, %c0_0] : memref<2x128xf32, #tpu.memory_space<vmem>>, vector<2x128xf32>
    %c0_1 = arith.constant 0 : index
    %c0_2 = arith.constant 0 : index
    %1 = vector.load %arg2[%c0_1, %c0_2] : memref<30x2xf32, #tpu.memory_space<vmem>>, vector<30x2xf32>
    %cst = arith.constant dense<0.000000e+00> : vector<30x128xf32>
    %2 = tpu.matmul %1, %0, %cst {dimension_numbers = #tpu.dot_dimension_numbers<[1], [0], [0], [1], [0, 0, 1, 1], [], []>} : vector<30x2xf32>, vector<2x128xf32>, vector<30x128xf32> -> vector<30x128xf32>
    %c0_3 = arith.constant 0 : index
    %c0_4 = arith.constant 0 : index
    %3 = vector.load %arg3[%c0_3, %c0_4] : memref<30x1xf32, #tpu.memory_space<vmem>>, vector<30x1xf32>
    %4 = vector.broadcast %3 : vector<30x1xf32> to vector<30x128xf32>
    %5 = arith.addf %2, %4 : vector<30x128xf32>
    %cst_5 = arith.constant 0.000000e+00 : f32
    %6 = vector.broadcast %cst_5 : f32 to vector<30x128xf32>
    %7 = arith.maximumf %5, %6 : vector<30x128xf32>
    %c0_6 = arith.constant 0 : index
    %c0_7 = arith.constant 0 : index
    %8 = vector.load %arg4[%c0_6, %c0_7] : memref<20x30xf32, #tpu.memory_space<vmem>>, vector<20x30xf32>
    %cst_8 = arith.constant dense<0.000000e+00> : vector<20x128xf32>
    %9 = tpu.matmul %8, %7, %cst_8 {dimension_numbers = #tpu.dot_dimension_numbers<[1], [0], [0], [1], [0, 0, 1, 1], [], []>} : vector<20x30xf32>, vector<30x128xf32>, vector<20x128xf32> -> vector<20x128xf32>
    %c0_9 = arith.constant 0 : index
    %c0_10 = arith.constant 0 : index
    %10 = vector.load %arg5[%c0_9, %c0_10] : memref<20x1xf32, #tpu.memory_space<vmem>>, vector<20x1xf32>
    %11 = vector.broadcast %10 : vector<20x1xf32> to vector<20x128xf32>
    %12 = arith.addf %9, %11 : vector<20x128xf32>
    %cst_11 = arith.constant 0.000000e+00 : f32
    %13 = vector.broadcast %cst_11 : f32 to vector<20x128xf32>
    %14 = arith.maximumf %12, %13 : vector<20x128xf32>
    %c0_12 = arith.constant 0 : index
    %c0_13 = arith.constant 0 : index
    %15 = vector.load %arg6[%c0_12, %c0_13] : memref<4x20xf32, #tpu.memory_space<vmem>>, vector<4x20xf32>
    %cst_14 = arith.constant dense<0.000000e+00> : vector<4x128xf32>
    %16 = tpu.matmul %15, %14, %cst_14 {dimension_numbers = #tpu.dot_dimension_numbers<[1], [0], [0], [1], [0, 0, 1, 1], [], []>} : vector<4x20xf32>, vector<20x128xf32>, vector<4x128xf32> -> vector<4x128xf32>
    %c0_15 = arith.constant 0 : index
    %c0_16 = arith.constant 0 : index
    %17 = vector.load %arg7[%c0_15, %c0_16] : memref<4x1xf32, #tpu.memory_space<vmem>>, vector<4x1xf32>
    %18 = vector.broadcast %17 : vector<4x1xf32> to vector<4x128xf32>
    %19 = arith.addf %16, %18 : vector<4x128xf32>
    %cst_17 = arith.constant dense<0xFF800000> : vector<128xf32>
    %20 = vector.multi_reduction <maximumf>, %19, %cst_17 [0] : vector<4x128xf32> to vector<128xf32>
    %21 = vector.shape_cast %20 : vector<128xf32> to vector<1x128xf32>
    %22 = vector.broadcast %21 : vector<1x128xf32> to vector<4x128xf32>
    %23 = arith.subf %19, %22 : vector<4x128xf32>
    %24 = math.exp %23 : vector<4x128xf32>
    %cst_18 = arith.constant dense<0.000000e+00> : vector<128xf32>
    %25 = vector.multi_reduction <add>, %24, %cst_18 [0] : vector<4x128xf32> to vector<128xf32>
    %26 = vector.shape_cast %25 : vector<128xf32> to vector<1x128xf32>
    %27 = math.log %26 : vector<1x128xf32>
    %28 = vector.broadcast %27 : vector<1x128xf32> to vector<4x128xf32>
    %29 = arith.subf %23, %28 : vector<4x128xf32>
    %c0_19 = arith.constant 0 : index
    %c0_20 = arith.constant 0 : index
    %30 = vector.load %arg8[%c0_19, %c0_20] : memref<4x128xf32, #tpu.memory_space<vmem>>, vector<4x128xf32>
    tpu.vector_store %arg8[%c0_19, %c0_20], %29 {strides = array<i32>} : memref<4x128xf32, #tpu.memory_space<vmem>>, vector<4x128xf32>,
    return
  }
  func.func @transform_0(%arg0: i32) -> (i32, i32) {
    %c0_i32 = arith.constant 0 : i32
    %c0_i32_0 = arith.constant 0 : i32
    return %c0_i32, %arg0 : i32, i32
  }
  func.func @transform_1(%arg0: i32) -> (i32, i32) {
    %c0_i32 = arith.constant 0 : i32
    %c0_i32_0 = arith.constant 0 : i32
    %c0_i32_1 = arith.constant 0 : i32
    return %c0_i32, %c0_i32_0 : i32, i32
  }
  func.func @transform_2(%arg0: i32) -> (i32, i32) {
    %c0_i32 = arith.constant 0 : i32
    %c0_i32_0 = arith.constant 0 : i32
    %c0_i32_1 = arith.constant 0 : i32
    return %c0_i32, %c0_i32_0 : i32, i32
  }
  func.func @transform_3(%arg0: i32) -> (i32, i32) {
    %c0_i32 = arith.constant 0 : i32
    %c0_i32_0 = arith.constant 0 : i32
    %c0_i32_1 = arith.constant 0 : i32
    return %c0_i32, %c0_i32_0 : i32, i32
  }
  func.func @transform_4(%arg0: i32) -> (i32, i32) {
    %c0_i32 = arith.constant 0 : i32
    %c0_i32_0 = arith.constant 0 : i32
    %c0_i32_1 = arith.constant 0 : i32
    return %c0_i32, %c0_i32_0 : i32, i32
  }
  func.func @transform_5(%arg0: i32) -> (i32, i32) {
    %c0_i32 = arith.constant 0 : i32
    %c0_i32_0 = arith.constant 0 : i32
    %c0_i32_1 = arith.constant 0 : i32
    return %c0_i32, %c0_i32_0 : i32, i32
  }
  func.func @transform_6(%arg0: i32) -> (i32, i32) {
    %c0_i32 = arith.constant 0 : i32
    %c0_i32_0 = arith.constant 0 : i32
    %c0_i32_1 = arith.constant 0 : i32
    return %c0_i32, %c0_i32_0 : i32, i32
  }
  func.func @transform_7(%arg0: i32) -> (i32, i32) {
    %c0_i32 = arith.constant 0 : i32
    %c0_i32_0 = arith.constant 0 : i32
    return %c0_i32, %arg0 : i32, i32
  }
}

</mosaic_0001>

<bundles_post_ra>
// kernel: fcnet_forward_t.1
= control target key start
LH: loop header
LB: loop body
LE: loop exit
PB: predicated region body
PF: predicated region fallthrough
CT: control target
= control target key end

     0   :  { %12 = vsyncpa [#allocation3], 0  ;;  %s866_s0 = inlined_call_operand.vmem [shape: f32[2,256], index: 0, kind: input, shape index: {}]   ;;  %s867_s1 = inlined_call_operand.vmem [shape: f32[30,2], index: 1, kind: input, shape index: {}]   ;;  %s868_s2 = inlined_call_operand.vmem [shape: f32[30,1], index: 2, kind: input, shape index: {}]   ;;  %s869_s3 = inlined_call_operand.vmem [shape: f32[20,30], index: 3, kind: input, shape index: {}]   ;;  %s870_s4 = inlined_call_operand.vmem [shape: f32[20,1], index: 4, kind: input, shape index: {}]   ;;  %s871_s5 = inlined_call_operand.vmem [shape: f32[4,20], index: 5, kind: input, shape index: {}]   ;;  %s872_s6 = inlined_call_operand.vmem [shape: f32[4,1], index: 6, kind: input, shape index: {}]   ;;  %s873_s7 = inlined_call_operand.hbm [shape: f32[4,256], index: 7, kind: output, shape index: {}]  }
   0x1   :  { %14 = vsyncpa [#allocation3 + $0x1], 0  ;;  %s726_s24 = smov 0   ;;  %s728_s25 = smov 0  }
   0x2   :  { %s730_s26 = smov 0   ;;  %s732_s27 = smov 0  }
   0x3 LB: > { %s747_s28 = sadd.s32 4294967295, %s683_s27   ;;  %s548_s29 = sadd.s32 4294967294, %s683_s27   ;;  %s683_s27 = sphi %s732_s27, %s879_s27   ;;  %s679_s26 = sphi %s730_s26, %s878_s26   ;;  %s675_s25 = sphi %s728_s25, %s877_s25   ;;  %s671_s24 = sphi %s726_s24, %s876_s24  }
   0x4   : > { %s751_s30 = sadd.s32 1, %s683_s27   ;;  %s179_s8 = sadd.s32 1, %s679_s26 }
   0x5   : > { %s176_s9 = ssub.s32 %s683_s27, %s751_s30  ;;  %p189_p0 = scmp.ne.s32.totalorder %s679_s26, %s675_s25 }
   0x6   : > { %p177_p1 = scmp.eq.s32.totalorder %s176_s9, 0  ;;  %p190_p2 = scmp.eq.s32.totalorder %s747_s28, 1 }
   0x7   : > { %p195_p3 = scmp.ne.s32.totalorder %s675_s25, %s671_s24  ;;  %p196_p4 = scmp.eq.s32.totalorder %s548_s29, 1 }
   0x8   : > { %s762_s10 = scalar_select %p177_p1, %s679_s26, %s179_s8  }
   0x9   : > { %p764_p5 = por %p190_p2, %p189_p0  ;;  %p768_p6 = por %p196_p4, %p195_p3 }
   0xa   : > { %p551_p7 = scmp.ge.s32.totalorder %s683_s27, 1  ;;  %p239_p8 = scmp.lt.s32.totalorder %s683_s27, 3 }
   0xc   : > { %p240_p9 = pnand %p551_p7, %p239_p8 }
   0xd   : > { %p270_p10 = scmp.lt.s32.totalorder (!%p240_p9), %s747_s28, 1  ;;  %s267_s22 = sand.u32 (!%p240_p9), 1, %s675_s25  }
   0xe   : > { %243 = sbr.rel (%p240_p9) target bundleno = 512 (0x200), region = 48  ;;  %s552_s23 = sshll.u32 (!%p240_p9), %s267_s22, 2 }
   0xf   : > { %s566_s29 = sshll.u32 (!%p240_p9), %s747_s28, 2  ;;  %s269_s14 = scalar_lea.vmem (!%p240_p9), [#allocation2], %s552_s23 }
  0x10   : > { %s484_s13 = scalar_lea.hbm (!%p240_p9), %s873_s7, %s566_s29  ;;  %s486_s15 = sshll.u32 (!%p240_p9), %s269_s14, 4  ;;  %s487_s15 = int_to_ptr.vmem [resolvable:$true] %s486_s15 }
  0x11   : > { %s488_s16 = sshll.u32 (!%p240_p9), %s484_s13, 4  ;;  %s489_s16 = int_to_ptr.hbm [resolvable:$true] %s488_s16 }
  0x13   : > { %v685_v0 = vmov 0   ;;  %v282_v1 = vld [vmem:[%s868_s2 + $0x18] sm:$0x3f]  ;;  %v280_v2 = vld [vmem:[%s868_s2 + $0x8] sm:$0xff]  ;;  %s271_s17 = scalar_select %p270_p10, %s747_s28, 1  ;;  %vm316_vm0 = vcmask 1041408  }
  0x14   : > { %614 = vset.pattern.permute.xlu0 %v685_v0  ;;  %615 = vset.pattern.permute.xlu1 %v685_v0  ;;  %v276_v3 = vld [vmem:[%s867_s1 + $0x8] sm:$0xff]  ;;  %vm303_vm1 = vcmask 15360   ;;  %v275_v4 = vld [vmem:[%s867_s1] sm:$0xff]  ;;  %v281_v6 = vld [vmem:[%s868_s2 + $0x10] sm:$0xff]  ;;  %vm384_vm2 = vcmask 1045504   ;;  %vm374_vm3 = vcmask 244736  }
  0x15   : > { %300 = vperm.xlu0 %614, %v282_v1   ;;  %290 = vperm.xlu1 %615, %v280_v2   ;;  %s553_s18 = sshll.u32 %s271_s17, 1  ;;  %v279_v7 = vld [vmem:[%s868_s2] sm:$0xff]  ;;  %v277_v8 = vld [vmem:[%s867_s1 + $0x10] sm:$0xff]  ;;  %v278_v11 = vld [vmem:[%s867_s1 + $0x18] sm:$0x3f]  ;;  %vm428_vm4 = vcmask 1043456  }
  0x16   : > { %616 = vset.pattern.permute.xlu2 %v685_v0  ;;  %s273_s21 = scalar_lea.vmem %s866_s0, %s553_s18  ;;  %v356_v9 = vld [vmem:[%s870_s4] sm:$0xff]  ;;  %v358_v13 = vld [vmem:[%s870_s4 + $0x10] sm:$0xf]  ;;  %v357_v17 = vld [vmem:[%s870_s4 + $0x8] sm:$0xff]  ;;  %vm424_vm5 = vcmask 162816   ;;  %s474_s17 = scalar_lea.sflag [#allocation3], %s267_s22 }
  0x17   : > { %v274_v5 = vld [vmem:[%s273_s21] sm:$0x3]  ;;  %371 = vperm.xlu2 %616, %v358_v13   ;;  %v354_v31 = vld [vmem:[%s869_s3 + $0x8] sm:$0xff]  ;;  %v355_v32 = vld [vmem:[%s869_s3 + $0x10] sm:$0xf]  ;;  %s635_s18 = sshra.s32 %s489_s16, 4  ;;  %s636_s18 = int_to_ptr.hbm [resolvable:$true] %s635_s18 }
  0x18   : > { %569 = vmatpush.msk.msra.mxu3 %vm316_vm0, %v274_v5  ;;  %554 = vmatpush.msk.msra.mxu0 %vm316_vm0, %v274_v5  ;;  %v418_v10 = vld [vmem:[%s872_s6] sm:$0xf]  ;;  %s637_s19 = scalar_lea.hbm %s636_s18, 4  ;;  %s641_s21 = scalar_lea.hbm %s873_s7, 8 }
  0x19   : > { %556 = vmatmul.msk.f32.vlgmr.msra.gmra.mxu3 %vm303_vm1, %v276_v3  ;;  %555 = vmatmul.msk.f32.vlgmr.msra.gmra.mxu0 %vm303_vm1, %v275_v4  ;;  %v353_v30 = vld [vmem:[%s869_s3] sm:$0xff]  ;;  %p638_p11 = scmp.ne.s32.totalorder %s636_s18, %s637_s19  ;;  %p642_p0 = scmp.lt.s32.totalorder %s636_s18, %s873_s7 }
  0x1a   : > { %v417_v45 = vld [vmem:[%s871_s5] sm:$0xf]  ;;  %p643_p1 = scmp.lt.s32.totalorder %s641_s21, %s637_s19 }
  0x1b   : > { %p639_p12 = pnand %p638_p11, %p764_p5 }
  0x1c   : > { %p644_p2 = por %p643_p1, %p642_p0 }
  0x1d   : > { %295 = vperm.xlu0 %614, %v281_v6   ;;  %285 = vperm.xlu1 %615, %v279_v7   ;;  %p640_p13 = pneg %p639_p12 }
  0x1f   : > { %366 = vperm.xlu2 %616, %v357_v17   ;;  %p645_p3 = pnand %p644_p2, %p640_p13 }
  0x21   : > { %557 = vmatmul.msk.f32.gmra.mxu3 %vm303_vm1, %v277_v8 }
  0x25   : > { %361 = vperm.xlu0 %614, %v356_v9   ;;  %421 = vperm.xlu1 %615, %v418_v10  }
  0x29   : > { %558 = vmatmul.msk.f32.gmra.mxu3 %vm303_vm1, %v278_v11 }
  0x71   : > { %v372_v33 = vpop.permute.xlu2 %371 }
  0x79   : > { %v367_v35 = vpop.permute.xlu2 %366 }
  0x87   : > { %v301_v14 = vpop.permute.xlu0 %300  ;;  %v291_v16 = vpop.permute.xlu1 %290 }
  0x8f   : > { %v296_v18 = vpop.permute.xlu0 %295  ;;  %v286_v25 = vpop.permute.xlu1 %285 }
  0x96   : > { %v337_v22 = vpop.f32.mrf.mxu0 }
  0x97   : > { %v338_v27 = vadd.f32 %v337_v22, %v286_v25  ;;  %v362_v40 = vpop.permute.xlu0 %361  ;;  %v422_v46 = vpop.permute.xlu1 %421 }
  0x99   : > { %v349_v29 = vmax.f32 %v338_v27, 0.0 }
  0x9c   : > { %v340_v12 = vpop.f32.mrf.mxu3 }
  0x9d   : > { %v341_v23 = vadd.f32 %v340_v12, %v291_v16 }
  0x9f   : > { %v350_v28 = vmax.f32 %v341_v23, 0.0 }
  0xa4   : > { %v343_v15 = vpop.f32.mrf.mxu3 }
  0xa5   : > { %v344_v20 = vadd.f32 %v343_v15, %v296_v18 }
  0xa7   : > { %v351_v26 = vmax.f32 %v344_v20, 0.0 }
  0xac   : > { %v346_v19 = vpop.f32.mrf.mxu3 }
  0xad   : > { %v347_v21 = vadd.f32 %v346_v19, %v301_v14 }
  0xaf   : > { %v352_v24 = vmax.f32 %v347_v21, 0.0 }
  0xb1   : > { %559 = vmatpush.msk.msrb.mxu0 %vm384_vm2, %v352_v24  ;;  %570 = vmatpush.msk.msra.mxu1 %vm384_vm2, %v352_v24 }
  0xb3   : > { %401 = vmatpush.msrb.mxu0 %v351_v26  ;;  %571 = vmatpush.msra.mxu1 %v351_v26 }
  0xb5   : > { %402 = vmatpush.msrb.mxu0 %v350_v28  ;;  %572 = vmatpush.msra.mxu1 %v350_v28 }
  0xb7   : > { %403 = vmatpush.msrb.mxu0 %v349_v29  ;;  %573 = vmatpush.msra.mxu1 %v349_v29 }
  0xb8   : > { %560 = vmatmul.msk.f32.vlgmr.msrb.gmra.mxu0 %vm374_vm3, %v353_v30  ;;  %561 = vmatmul.msk.f32.vlgmr.msra.gmra.mxu1 %vm374_vm3, %v354_v31 }
  0xc0   : > { %562 = vmatmul.msk.f32.gmra.mxu1 %vm374_vm3, %v355_v32 }
 0x135   : > { %v408_v34 = vpop.f32.mrf.mxu1  ;;  %v405_v36 = vpop.f32.mrf.mxu0 }
 0x136   : > { %v409_v38 = vadd.f32 %v408_v34, %v367_v35  ;;  %v406_v41 = vadd.f32 %v405_v36, %v362_v40 }
 0x138   : > { %v415_v43 = vmax.f32 %v409_v38, 0.0  ;;  %v414_v44 = vmax.f32 %v406_v41, 0.0 }
 0x13d   : > { %v411_v37 = vpop.f32.mrf.mxu1 }
 0x13e   : > { %v412_v39 = vadd.f32 %v411_v37, %v372_v33 }
 0x140   : > { %v416_v42 = vmax.f32 %v412_v39, 0.0 }
 0x142   : > { %563 = vmatpush.msk.msra.mxu2 %vm428_vm4, %v416_v42 }
 0x144   : > { %446 = vmatpush.msra.mxu2 %v415_v43 }
 0x146   : > { %447 = vmatpush.msra.mxu2 %v414_v44 }
 0x147   : > { %564 = vmatmul.msk.f32.vlgmr.msra.gmra.mxu2 %vm424_vm5, %v417_v45 }
 0x1ca   : > { %v449_v47 = vpop.f32.mrf.mxu2 }
 0x1cb   : > { %v450_v48 = vadd.f32 %v449_v47, %v422_v46 }
 0x1cd   : > { %v452_v49 = vsel %vm428_vm4, %v450_v48, -inf }
 0x1ce   : > { %v453_v50 = vrot.slane %v452_v49, 4 }
 0x1d0   : > { %v454_v51 = vmax.f32 %v452_v49, %v453_v50 }
 0x1d2   : > { %v455_v52 = vrot.slane %v454_v51, 2 }
 0x1d4   : > { %v456_v53 = vmax.f32 %v454_v51, %v455_v52 }
 0x1d6   : > { %v457_v54 = vrot.slane %v456_v53, 1 }
 0x1d8   : > { %v458_v55 = vmax.f32 %v456_v53, %v457_v54 }
 0x1da   : > { %v459_v56 = vsub.f32 %v450_v48, %v458_v55 }
 0x1dc   : > { %v460_v57 = vmul.f32 1.442695, %v459_v56 }
 0x1de   : > { %617 = vpow2.f32 %v460_v57 }
 0x1e4   : > { %v618_v58 = vpop.eup %617 }
 0x1e5   : > { %v462_v59 = vsel %vm428_vm4, %v618_v58, 0.0 }
 0x1e6   : > { %v463_v60 = vrot.slane %v462_v59, 4 }
 0x1e8   : > { %v464_v61 = vadd.f32 %v463_v60, %v462_v59 }
 0x1ea   : > { %v465_v62 = vrot.slane %v464_v61, 2 }
 0x1ec   : > { %v466_v63 = vadd.f32 %v465_v62, %v464_v61 }
 0x1ee   : > { %v467_v0 = vrot.slane %v466_v63, 1 }
 0x1f0   : > { %v468_v1 = vadd.f32 %v467_v0, %v466_v63 }
 0x1f2   : > { %619 = vlog2.f32 %v468_v1 }
 0x1f8   : > { %v620_v2 = vpop.eup %619 }
 0x1f9   : > { %v470_v3 = vmul.f32 0.6931472, %v620_v2 }
 0x1fb   : > { %v471_v4 = vsub.f32 %v459_v56, %v470_v3 }
 0x1fd   : > { %472 = vst [vmem:[%s269_s14] sm:$0xf] %v471_v4 }
 0x1fe   : > { %648 = shalt.err (!%p645_p3)
}
 0x1ff   : > { %574 = dma.vmem_to_hbm [thread:$0]  (%p764_p5), %s487_s15, 64, %s489_s16, %s474_s17  }
 0x200 PF: > { %p580_p4 = scmp.ge.s32.totalorder %s683_s27, 2  ;;  %s500_s22 = sand.u32 1, %s671_s24  }
 0x201   : > { %s501_s8 = scalar_lea.sflag [#allocation3], %s500_s22 }
 0x202   : > { %p577_p7 = pnand %p580_p4, %p768_p6 }
 0x204   : > { %p578_p8 = pneg %p577_p7 }
 0x206   : > { %666 = dma.done.wait (%p578_p8), %s501_s8, 64  }
 0x207   : > { %668 = vsyncadd (%p578_p8), %s501_s8, 4294967232  ;;  %p17_p9 = scmp.ge.s32.totalorder %s751_s30, 4   ;;  %s876_s24 = smov %s675_s25 }
 0x208   : > { %s877_s25 = smov %s679_s26  ;;  %s878_s26 = smov %s762_s10 }
 0x209   : > { %s879_s27 = smov %s751_s30  ;;  %19 = sbr.rel (!%p17_p9) target bundleno = 3 (0x3), region = 83 }
 0x20e   :  { %507 = vsyncpa [#allocation3], 1 }
 0x20f   :  { %509 = vsyncpa [#allocation3 + $0x1], 1 }

</bundles_post_ra>
